<compile_context>
chip_gen: v6e
topology: v6e:2x2x1
jax: 0.10.0
libtpu: 0.0.40
codegen_flags: <defaults>
</compile_context>

<pallas_src>
import jax
import jax.numpy as jnp
from jax import lax
from jax.experimental import pallas as pl
from jax.experimental.pallas import tpu as pltpu

_SMALL_B = 256           # no-grid path only below this batch (v7x wants >=2 grid steps above)
_TM_CAP = 2048           # max batch-tile rows
_TK = 512                # feature (K) tile for the auto wide-feature path
_KTILE_MIN_NIN = 2048    # only auto K-tile when n_in is at least this wide
_VMEM_BUDGET = 8 << 20   # conservative tile budget; fits default scoped VMEM on v5e/v6e/v7x


def _round_up(x, m):
    return (x + m - 1) // m * m


def _cost(B, n_in, n_out, itemsize):
    return pl.CostEstimate(
        flops=2 * B * n_in * n_out,
        transcendentals=0,
        bytes_accessed=itemsize * (B * n_in + n_in * n_out + n_out + B * n_out),
    )


def _linear_kernel(x_ref, wt_ref, b_ref, o_ref):
    # x_ref : (TM, K)   input rows
    # wt_ref: (K, N)    pre-transposed weight (init-time), canonical MXU feed
    # b_ref : (1, N)    bias, broadcast over rows
    # o_ref : (TM, N)   output (true n_out; full-dim block)
    acc = lax.dot_general(
        x_ref[...], wt_ref[...],
        dimension_numbers=(((1,), (0,)), ((), ())),
        preferred_element_type=jnp.float32,
    )
    o_ref[...] = (acc + b_ref[...]).astype(o_ref.dtype)


def _linear_kernel_ktiled(x_ref, wt_ref, b_ref, o_ref, acc_ref):
    # K-tiled variant: grid = (batch_blocks, k_blocks); f32 accumulator scratch.
    k = pl.program_id(1)

    @pl.when(k == 0)
    def _():
        acc_ref[...] = jnp.zeros_like(acc_ref)

    acc_ref[...] += lax.dot_general(
        x_ref[...], wt_ref[...],
        dimension_numbers=(((1,), (0,)), ((), ())),
        preferred_element_type=jnp.float32,
    )

    @pl.when(k == pl.num_programs(1) - 1)
    def _():
        o_ref[...] = (acc_ref[...] + b_ref[...]).astype(o_ref.dtype)


def prepare_params(weight, bias):
    """One-time (init-time) parameter prep, outside the hot path.

    Stores W^T with shape (n_in, n_out) so the kernel runs the native
    (M,K)x(K,N) MXU contraction; no per-call transpose and no n_out padding
    (true-width output keeps HBM traffic minimal for this memory-bound op).
    # NOTE: optionally cast the weight to bfloat16 here (keep f32 accumulation
    # in the kernel) to halve weight bytes once numerics are validated.
    """
    wt = jnp.asarray(weight).T              # (n_in, n_out), materialized once
    b2 = jnp.asarray(bias).reshape(1, -1)   # (1, n_out)
    return wt, b2


def logistic_regression_forward(x, wt, b2, *, k_tile=None):
    """y = x @ W^T + b with pre-transposed params from prepare_params().

    x: (B, n_in) f32; wt: (n_in, n_out); b2: (1, n_out).  Returns (B, n_out).
    k_tile: optional feature-tile override (must divide n_in, multiple of 128).
    """
    B, n_in = x.shape
    n_out = wt.shape[1]
    itemsize = x.dtype.itemsize
    cost = _cost(B, n_in, n_out, itemsize)

    # ---- small-batch, no-grid path: whole arrays in VMEM, zero pipeline setup ----
    small_bytes = itemsize * (B * n_in + n_in * n_out + n_out + B * n_out)
    if B <= _SMALL_B and small_bytes <= _VMEM_BUDGET and k_tile is None:
        return pl.pallas_call(
            _linear_kernel,
            out_shape=jax.ShapeDtypeStruct((B, n_out), x.dtype),
            in_specs=[
                pl.BlockSpec(memory_space=pltpu.MemorySpace.VMEM),
                pl.BlockSpec(memory_space=pltpu.MemorySpace.VMEM),
                pl.BlockSpec(memory_space=pltpu.MemorySpace.VMEM),
            ],
            out_specs=pl.BlockSpec(memory_space=pltpu.MemorySpace.VMEM),
            cost_estimate=cost,
        )(x, wt, b2)

    # ---- choose feature (K) tiling ----
    if k_tile is not None:
        assert n_in % k_tile == 0 and k_tile % 128 == 0, "k_tile must divide n_in and be a multiple of 128"
        tk = k_tile
    elif n_in >= _KTILE_MIN_NIN and n_in % _TK == 0:
        tk = _TK  # wide features: stream K tiles instead of keeping W resident (v7x VMEM)
    else:
        # TODO(synk): ragged-K masking for very wide n_in that is not a multiple of 512.
        tk = n_in

    # ---- adaptive batch tile ----
    w_bytes = 2 * itemsize * tk * n_out                 # weight block(s), double-buffered
    bytes_per_row = 2 * itemsize * (tk + n_out)         # double-buffered x + out tiles
    row_budget = max(_VMEM_BUDGET - w_bytes, 1 << 20)
    tm = min(_TM_CAP, (row_budget // bytes_per_row) // 8 * 8)
    # keep >= 2 grid steps on the "parallel" batch axis so v7x's two TensorCores
    # both get work (no effect on single-TC v5e/v6e)
    tm = min(tm, _round_up(pl.cdiv(B, 2), 8))
    tm = max(8, tm)
    nb = pl.cdiv(B, tm)

    if tk == n_in:
        # Resident-weight path: 1-D batch grid, W/bias stay in VMEM across steps.
        kernel = _linear_kernel
        grid = (nb,)
        in_specs = [
            pl.BlockSpec((tm, n_in), lambda i: (i, 0)),       # x tiles stream
            pl.BlockSpec((n_in, n_out), lambda i: (0, 0)),    # W^T resident
            pl.BlockSpec((1, n_out), lambda i: (0, 0)),       # bias resident
        ]
        out_spec = pl.BlockSpec((tm, n_out), lambda i: (i, 0))
        scratch = []
        dims = ("parallel",)
    else:
        # K-tiled path: accumulate in f32 VMEM scratch, finalize on last K step.
        kernel = _linear_kernel_ktiled
        nk = n_in // tk
        grid = (nb, nk)
        in_specs = [
            pl.BlockSpec((tm, tk), lambda i, k: (i, k)),
            pl.BlockSpec((tk, n_out), lambda i, k: (k, 0)),
            pl.BlockSpec((1, n_out), lambda i, k: (0, 0)),
        ]
        out_spec = pl.BlockSpec((tm, n_out), lambda i, k: (i, 0))
        scratch = [pltpu.VMEM((tm, n_out), jnp.float32)]
        dims = ("parallel", "arbitrary")

    return pl.pallas_call(
        kernel,
        out_shape=jax.ShapeDtypeStruct((B, n_out), x.dtype),   # true B: no pad, no slice
        grid=grid,
        in_specs=in_specs,
        out_specs=out_spec,
        scratch_shapes=scratch,
        compiler_params=pltpu.CompilerParams(dimension_semantics=dims),
        cost_estimate=cost,
    )(x, wt, b2)


if __name__ == "__main__":
    key = jax.random.PRNGKey(0)
    k_w, k_b, k1, k2, k3, k_w2, k_b2 = jax.random.split(key, 7)

    # Module config: nn.Linear(n_in, n_out) with small shapes.
    n_in, n_out = 32, 16
    bound = 1.0 / (n_in ** 0.5)   # nn.Linear default init range
    weight = jax.random.uniform(k_w, (n_out, n_in), jnp.float32, -bound, bound)
    bias = jax.random.uniform(k_b, (n_out,), jnp.float32, -bound, bound)
    wt, b2 = prepare_params(weight, bias)

    def ref(xx, ww, bb):
        return jnp.matmul(xx, ww.T, precision=jax.lax.Precision.HIGHEST) + bb

    # Tolerance accommodates MXU f32-emulation pass count while still catching
    # any indexing/layout bug (those produce O(1) errors).
    ATOL = RTOL = 5e-3

    # 1) Small batch -> no-grid whole-array path.
    x_small = jax.random.normal(k1, (8, n_in), jnp.float32)
    y1 = logistic_regression_forward(x_small, wt, b2)
    jax.block_until_ready(y1)
    assert y1.shape == (8, n_out)
    assert jnp.allclose(y1, ref(x_small, weight, bias), atol=ATOL, rtol=RTOL)

    # 2) Large ragged batch -> batch-tiled grid path (no hot-path pad / slice).
    x_big = jax.random.normal(k2, (1027, n_in), jnp.float32)
    y2 = logistic_regression_forward(x_big, wt, b2)
    jax.block_until_ready(y2)
    assert y2.shape == (1027, n_out)
    assert jnp.allclose(y2, ref(x_big, weight, bias), atol=ATOL, rtol=RTOL)

    # 3) Wider feature dim -> K-tiled accumulator path (forced via k_tile).
    n_in_w = 256
    bound_w = 1.0 / (n_in_w ** 0.5)
    weight_w = jax.random.uniform(k_w2, (n_out, n_in_w), jnp.float32, -bound_w, bound_w)
    bias_w = jax.random.uniform(k_b2, (n_out,), jnp.float32, -bound_w, bound_w)
    wt_w, b2_w = prepare_params(weight_w, bias_w)
    x_wide = jax.random.normal(k3, (300, n_in_w), jnp.float32)
    y3 = logistic_regression_forward(x_wide, wt_w, b2_w, k_tile=128)
    jax.block_until_ready(y3)
    assert y3.shape == (300, n_out)
    assert jnp.allclose(y3, ref(x_wide, weight_w, bias_w), atol=ATOL, rtol=RTOL)

    print("KERNEL_OK")
</pallas_src>

<mosaic_0001>
module attributes {stable_mosaic.version = 11 : i64} {
  func.func @_linear_kernel(%arg0: memref<8x32xf32, #tpu.memory_space<vmem>>, %arg1: memref<32x16xf32, #tpu.memory_space<vmem>>, %arg2: memref<1x16xf32, #tpu.memory_space<vmem>>, %arg3: memref<8x16xf32, #tpu.memory_space<vmem>>) attributes {dimension_semantics = [], scalar_prefetch = 0 : i64, scratch_operands = 0 : i64, tpu.core_type = #tpu.core_type<tc>} {
    %c0 = arith.constant 0 : index
    %c0_0 = arith.constant 0 : index
    %0 = vector.load %arg0[%c0, %c0_0] : memref<8x32xf32, #tpu.memory_space<vmem>>, vector<8x32xf32>
    %c0_1 = arith.constant 0 : index
    %c0_2 = arith.constant 0 : index
    %1 = vector.load %arg1[%c0_1, %c0_2] : memref<32x16xf32, #tpu.memory_space<vmem>>, vector<32x16xf32>
    %cst = arith.constant dense<0.000000e+00> : vector<8x16xf32>
    %2 = tpu.matmul %0, %1, %cst {dimension_numbers = #tpu.dot_dimension_numbers<[1], [0], [0], [1], [0, 0, 1, 1], [], []>} : vector<8x32xf32>, vector<32x16xf32>, vector<8x16xf32> -> vector<8x16xf32>
    %c0_3 = arith.constant 0 : index
    %c0_4 = arith.constant 0 : index
    %3 = vector.load %arg2[%c0_3, %c0_4] : memref<1x16xf32, #tpu.memory_space<vmem>>, vector<1x16xf32>
    %4 = vector.broadcast %3 : vector<1x16xf32> to vector<8x16xf32>
    %5 = arith.addf %2, %4 : vector<8x16xf32>
    %c0_5 = arith.constant 0 : index
    %c0_6 = arith.constant 0 : index
    %6 = vector.load %arg3[%c0_5, %c0_6] : memref<8x16xf32, #tpu.memory_space<vmem>>, vector<8x16xf32>
    tpu.vector_store %arg3[%c0_5, %c0_6], %5 {strides = array<i32>} : memref<8x16xf32, #tpu.memory_space<vmem>>, vector<8x16xf32>,
    return
  }
}

</mosaic_0001>

<bundles_post_ra>
// kernel: tpu_custom_call.1
= control target key start
LH: loop header
LB: loop body
LE: loop exit
PB: predicated region body
PF: predicated region fallthrough
CT: control target
= control target key end

     0   :  { %v160_v1 = vmov 0.0   ;;  %vm161_vm0 = vmmov 0   ;;  %s204_s0 = inlined_call_operand.vmem [shape: f32[8,32], index: 0, kind: input, shape index: {}]   ;;  %s205_s1 = inlined_call_operand.vmem [shape: f32[32,16], index: 1, kind: input, shape index: {}]   ;;  %s206_s2 = inlined_call_operand.vmem [shape: f32[1,16], index: 2, kind: input, shape index: {}]   ;;  %s207_s3 = inlined_call_operand.hbm [shape: f32[8,16], index: 3, kind: output, shape index: {}]  }
   0x1   :  { %v19_v0 = vld [vmem:[%s205_s1 + $0x18] sm:$0xff]  ;;  %124 = vmatprep.subr.mxu0 %v160_v1  ;;  %v18_v2 = vld [vmem:[%s205_s1 + $0x10] sm:$0xff]  ;;  %132 = vmatprep.mubr.msk.f32.mxu0 %vm161_vm0, %v160_v1 }
   0x2   :  { %125 = vmatpush3.msra.mxu0 %v19_v0 }
   0x3   :  { %8 = vsyncpa [#allocation3], 0  ;;  %126 = vmatprep.subr.mxu0 %v160_v1  ;;  %v17_v3 = vld [vmem:[%s205_s1 + $0x8] sm:$0xff]  ;;  %v16_v4 = vld [vmem:[%s205_s1] sm:$0xff]  ;;  %vm27_vm1 = vcmask 261120   ;;  %s162_s24 = smov [#allocation2]  }
   0x4   :  { %127 = vmatpush3.msra.mxu0 %v18_v2  ;;  %v15_v5 = vld [vmem:[%s204_s0] sm:$0xff]  ;;  %s109_s25 = sshll.u32 %s162_s24, 4  ;;  %vm101_vm2 = vcmask 130048   ;;  %s110_s25 = int_to_ptr.vmem [resolvable:$true] %s109_s25 }
   0x5   :  { %128 = vmatprep.subr.mxu0 %v160_v1  ;;  %v117_v6 = vld [vmem:[%s206_s2] ss:$0 sm:$0xff]  ;;  %s138_s1 = scalar_lea.vmem %s110_s25, 128  ;;  %p143_p1 = scmp.lt.s32.totalorder %s110_s25, %s110_s25 }
   0x6   :  { %129 = vmatpush3.msra.mxu0 %v17_v3  ;;  %p139_p0 = scmp.ne.s32.totalorder %s110_s25, %s138_s1  ;;  %p144_p2 = scmp.lt.s32.totalorder %s138_s1, %s138_s1 }
   0x7   :  { %130 = vmatprep.subr.mxu0 %v160_v1 }
   0x8   :  { %131 = vmatpush3.msra.mxu0 %v16_v4  ;;  %p145_p3 = por %p144_p2, %p143_p1 }
   0x9   :  { %133 = vmatmul.mubr.msk.f32.vlgmr.msra.gmra.mxu0 %vm27_vm1, %v15_v5 }
   0xa   :  { %p146_p4 = pnand %p145_p3, %p139_p0 }
  0xc9   :  { %v97_v7 = vpop.f32.mrf.mxu0 }
  0xca   :  { %v98_v8 = vadd.f32 %v117_v6, %v97_v7 }
  0xcb   :  { %v134_v9 = vpop.f32.mrf.mxu0 }
  0xcc   :  { %102 = vst.msk [vmem:[#allocation2] sm:$0xff] %vm101_vm2, %v98_v8 }
  0xcd   :  { %149 = shalt.err (!%p146_p4)
}
  0xce   :  { %112 = dma.vmem_to_hbm [thread:$0]  %s110_s25, 128, %s207_s3, [#allocation3]  }
  0xcf   :  { %158 = dma.done.wait [#allocation3], 128  }
  0xd0   :  { %159 = vsyncadd [#allocation3], 4294967168 }
  0xd1   :  { %116 = vsyncpa [#allocation3], 1 }

</bundles_post_ra>
